<compile_context>
chip_gen: v6e
topology: v6e:2x2x1
jax: 0.10.0
libtpu: 0.0.40
codegen_flags: <defaults>
</compile_context>

<pallas_src>
import functools

import jax
import jax.numpy as jnp
from jax import lax
from jax.experimental import pallas as pl
from jax.experimental.pallas import tpu as pltpu


# ----------------------------------------------------------------------------
# VMEM budgeting helpers (generation-aware, lane/sublane-padding aware).
# ----------------------------------------------------------------------------
def _round_up(x, m):
    return (x + m - 1) // m * m


def _vmem_cap_bytes():
    try:
        cap = int(pltpu.get_tpu_info().vmem_capacity_bytes)
        if cap > 0:
            return cap
    except Exception:
        pass
    return 64 * 1024 * 1024  # conservative fallback: v7x per-TensorCore VMEM


def _small_path_vmem_bytes(B, H):
    """Padding-aware estimate of the whole-block kernel's live f32 working set."""
    Bp = _round_up(B, 8)            # sublane padding of raw inputs
    B2p = _round_up(2 * B, 8)       # packed (2B, H) rows
    Hp = _round_up(H, 128)          # lane padding
    B2l = _round_up(2 * B, 128)     # lane padding of the (2B, 2B) logits
    words = (4 * Bp * Hp            # four raw input tiles
             + 4 * B2p * Hp         # normalized / concatenated / cast copies
             + 4 * B2p * B2l)       # logits, exp, mask/select temporaries
    return 4 * words


def _tiled_path_vmem_bytes(block, H):
    """Per-grid-step working set of the tiled kernel (double-buffered blocks)."""
    Hp = _round_up(H, 128)
    words = (2 * 2 * block * Hp                  # A and B tiles, double-buffered
             + 2 * block * 128                   # output tile, double-buffered
             + 2 * block                         # scratch accumulators
             + 4 * block * _round_up(block, 128))  # logits / exp / mask temps
    return 4 * words


def _pick_vmem_limit(est_bytes, cap_bytes):
    """Scoped VMEM limit: 2x the estimated working set, clamped to 90% of HW."""
    return int(min(int(0.9 * cap_bytes), max(32 * 1024 * 1024, 2 * est_bytes)))


# ----------------------------------------------------------------------------
# Small path: single whole-block fused kernel (both pairs packed in one MXU op).
# ----------------------------------------------------------------------------
def _contrast_small_kernel(d_seq_ref, d_hin_ref, p_seq_ref, p_hin_ref, out_ref,
                           *, tau, lam, mxu_dtype):
    f32 = jnp.float32
    inv_tau = f32(1.0 / tau)
    eps = f32(1e-8)

    def nrm(ref):
        z = ref[...].astype(f32)
        n2 = jnp.sum(z * z, axis=-1, keepdims=True)
        # EUP rsqrt; zero rows stay zero instead of producing inf/nan.
        return z * jnp.where(n2 > 0, lax.rsqrt(n2), f32(0))

    # Pack drug + protein pairs into one MXU issue: (2B, H) x (2B, H)^T.
    z1f = jnp.concatenate([nrm(d_seq_ref), nrm(p_seq_ref)], axis=0)   # (2B, H)
    z2f = jnp.concatenate([nrm(d_hin_ref), nrm(p_hin_ref)], axis=0)   # (2B, H)
    twoB = z1f.shape[0]
    B = twoB // 2

    # 1/tau is applied to the f32 logits (never baked into a bf16 operand).
    logits = lax.dot_general(z1f.astype(mxu_dtype), z2f.astype(mxu_dtype),
                             (((1,), (1,)), ((), ())),
                             preferred_element_type=f32) * inv_tau     # (2B, 2B)

    # Keep only the drug/drug and protein/protein diagonal blocks (mask, not
    # slice: the lane offset B is generally not 128-aligned).
    ri = lax.broadcasted_iota(jnp.int32, logits.shape, 0)
    ci = lax.broadcasted_iota(jnp.int32, logits.shape, 1)
    same_pair = (ri < B) == (ci < B)

    s = jnp.where(same_pair, jnp.exp(logits), f32(0))                  # EUP exp
    rowsum = jnp.sum(s, axis=1, keepdims=True)                         # (2B, 1)
    colsum = jnp.sum(s, axis=0, keepdims=True)                         # (1, 2B)

    # log(diag(s)) == diag(logits), computed in O(B*H) from normalized rows.
    diag_logits = jnp.sum(z1f * z2f, axis=-1, keepdims=True) * inv_tau  # (2B, 1)
    sum_diag = jnp.sum(diag_logits)

    # mean over the broadcast (B,B) matrix separates exactly into
    #   mean(log(rowsum + eps)) - mean(log(diag));
    # both pairs share the lam weights, so the 2B rows sum together and
    # divide by B to give (d_loss + p_loss) per direction.
    loss1 = (jnp.sum(jnp.log(rowsum + eps)) - sum_diag) / B            # seq -> HIN
    loss2 = (jnp.sum(jnp.log(colsum + eps)) - sum_diag) / B            # HIN -> seq

    out_ref[0] = f32(lam) * loss1 + f32(0.5 - lam) * loss2


def _fused_small_loss(d_seq, d_hin, p_seq, p_hin, *, tau, lam, mxu_dtype,
                      vmem_limit_bytes):
    B, H = d_seq.shape
    kernel = functools.partial(_contrast_small_kernel, tau=float(tau),
                               lam=float(lam), mxu_dtype=mxu_dtype)
    cost = pl.CostEstimate(
        flops=int(2 * (2 * B) * (2 * B) * H + 16 * B * H),
        transcendentals=int(4 * B * B + 10 * B),
        bytes_accessed=int(4 * B * H * 4 + 4),
    )
    out = pl.pallas_call(
        kernel,
        out_shape=jax.ShapeDtypeStruct((1,), jnp.float32),
        in_specs=[pl.BlockSpec(memory_space=pltpu.MemorySpace.VMEM)] * 4,
        out_specs=pl.BlockSpec(memory_space=pltpu.MemorySpace.SMEM),
        compiler_params=pltpu.CompilerParams(vmem_limit_bytes=vmem_limit_bytes),
        cost_estimate=cost,
    )(d_seq, d_hin, p_seq, p_hin)
    return out[0]


# ----------------------------------------------------------------------------
# Tiled path: flash-style (B,B) tiling, 4 row-parallel views, megacore-ready.
# ----------------------------------------------------------------------------
def _contrast_tiled_kernel(a_ref, b_ref, o_ref, rowsum_acc, diag_acc, *,
                           inv_tau, b_actual, block, mxu_dtype):
    f32 = jnp.float32
    rb = pl.program_id(1)
    cb = pl.program_id(2)
    ncb = pl.num_programs(2)

    @pl.when(cb == 0)
    def _init():
        rowsum_acc[...] = jnp.zeros_like(rowsum_acc)
        diag_acc[...] = jnp.zeros_like(diag_acc)

    a = a_ref[0]                                   # (block, H), pre-normalized rows
    b = b_ref[0]                                   # (block, H)
    # bf16 MXU feed (if requested); 1/tau applied to the f32 logits output.
    logits = lax.dot_general(a.astype(mxu_dtype), b.astype(mxu_dtype),
                             (((1,), (1,)), ((), ())),
                             preferred_element_type=f32) * f32(inv_tau)  # (blk, blk)
    s = jnp.exp(logits)                            # EUP; bounded by exp(1/tau)
    if b_actual % block != 0:                      # mask padded columns (static check)
        col = cb * block + lax.broadcasted_iota(jnp.int32, s.shape, 1)
        s = jnp.where(col < b_actual, s, f32(0))
    rowsum_acc[...] += jnp.sum(s, axis=1, keepdims=True)

    # With square blocks, the diagonal of the full matrix lives in cb == rb.
    @pl.when(cb == rb)
    def _diag():
        ri = lax.broadcasted_iota(jnp.int32, logits.shape, 0)
        ci = lax.broadcasted_iota(jnp.int32, logits.shape, 1)
        diag_acc[...] = jnp.sum(jnp.where(ri == ci, logits, f32(0)),
                                axis=1, keepdims=True)

    @pl.when(cb == ncb - 1)
    def _finalize():
        val = jnp.log(rowsum_acc[...] + f32(1e-8)) - diag_acc[...]      # (block, 1)
        # Lane-dense (unmasked) store; wrapper reads lane 0.
        o_ref[0] = jnp.broadcast_to(val, (val.shape[0], 128))


def _tiled_loss(d_seq, d_hin, p_seq, p_hin, *, tau, lam, mxu_dtype, block,
                vmem_limit_bytes):
    B, H = d_seq.shape
    f32 = jnp.float32

    # Row normalization is O(B*H) (negligible vs the O(B^2*H) kernel work) and
    # doing it once here avoids re-normalizing every streamed column tile.
    def nrm(z):
        z = z.astype(f32)
        n2 = jnp.sum(z * z, axis=-1, keepdims=True)
        return z * jnp.where(n2 > 0, lax.rsqrt(n2), f32(0))

    dsn, dhn, psn, phn = nrm(d_seq), nrm(d_hin), nrm(p_seq), nrm(p_hin)
    # 4 row-parallel views: rowsum of exp(A_v . C_v^T / tau) covers both
    # directions of both pairs (rowsum of S^T == colsum of S).
    A = jnp.stack([dsn, dhn, psn, phn])            # (4, B, H)
    C = jnp.stack([dhn, dsn, phn, psn])            # (4, B, H)

    Bp = _round_up(B, block)
    if Bp != B:
        A = jnp.pad(A, ((0, 0), (0, Bp - B), (0, 0)))
        C = jnp.pad(C, ((0, 0), (0, Bp - B), (0, 0)))
    nblk = Bp // block

    kernel = functools.partial(_contrast_tiled_kernel, inv_tau=float(1.0 / tau),
                               b_actual=B, block=block, mxu_dtype=mxu_dtype)
    cost = pl.CostEstimate(
        flops=int(4 * 2 * Bp * Bp * H),
        transcendentals=int(4 * Bp * Bp + 8 * Bp),
        bytes_accessed=int(4 * Bp * H * 4 * (1 + nblk) + 4 * Bp * 128 * 4),
    )
    out = pl.pallas_call(
        kernel,
        out_shape=jax.ShapeDtypeStruct((4, Bp, 128), jnp.float32),
        grid_spec=pltpu.PrefetchScalarGridSpec(
            num_scalar_prefetch=0,
            grid=(4, nblk, nblk),                  # (view, row_block, col_block)
            in_specs=[pl.BlockSpec((1, block, H), lambda v, rb, cb: (v, rb, 0)),
                      pl.BlockSpec((1, block, H), lambda v, rb, cb: (v, cb, 0))],
            out_specs=pl.BlockSpec((1, block, 128), lambda v, rb, cb: (v, rb, 0)),
            scratch_shapes=[pltpu.VMEM((block, 1), jnp.float32),   # rowsum acc
                            pltpu.VMEM((block, 1), jnp.float32)]), # diag acc
        compiler_params=pltpu.CompilerParams(
            # view & row-block axes shard across v7x's 2 TensorCores; the
            # column axis is the reduction (accumulator) axis.
            dimension_semantics=("parallel", "parallel", "arbitrary"),
            vmem_limit_bytes=vmem_limit_bytes),
        cost_estimate=cost,
    )(A, C)

    per_view = jnp.mean(out[:, :B, 0], axis=1)     # (4,): d1, d2, p1, p2
    return (f32(lam) * (per_view[0] + per_view[2])
            + f32(0.5 - lam) * (per_view[1] + per_view[3]))


# ----------------------------------------------------------------------------
# Dispatch + module wrapper.
# ----------------------------------------------------------------------------
def contrast_loss(d_seq_emb, p_seq_emb, d_HIN_emb, p_HIN_emb, *, tau, lam,
                  mxu_dtype=jnp.float32, block_rows=128, force_path=None):
    B, H = d_seq_emb.shape
    cap = _vmem_cap_bytes()
    budget = int(0.45 * cap)         # keep resident set ~50% of per-core VMEM (v7x!)
    est_small = _small_path_vmem_bytes(B, H)
    path = force_path or ("small" if est_small <= budget else "tiled")

    if path == "small":
        return _fused_small_loss(
            d_seq_emb, d_HIN_emb, p_seq_emb, p_HIN_emb, tau=tau, lam=lam,
            mxu_dtype=mxu_dtype,
            vmem_limit_bytes=_pick_vmem_limit(est_small, cap))

    est_tiled = _tiled_path_vmem_bytes(block_rows, H)
    if est_tiled > budget:
        # TODO(synk): add hidden-dim (K) tiling for H too large for one block.
        raise ValueError(f"hidden_dim={H} too large for block_rows={block_rows}")
    return _tiled_loss(
        d_seq_emb, d_HIN_emb, p_seq_emb, p_HIN_emb, tau=tau, lam=lam,
        mxu_dtype=mxu_dtype, block=block_rows,
        vmem_limit_bytes=_pick_vmem_limit(est_tiled, cap))


class Contrast:
    """JAX/Pallas port of Contrast (no learnable parameters)."""

    def __init__(self, hidden_dim, tau, lam, batch_size, *,
                 mxu_dtype=jnp.float32, block_rows=128):
        self.hidden_dim = hidden_dim
        self.tau = tau
        self.lam = lam
        self.batch_size = batch_size
        self.mxu_dtype = mxu_dtype        # jnp.bfloat16 recommended at production B,H
        self.block_rows = block_rows
        # NOTE: Config()/.cuda(...) device selection from the original module
        # is a no-op here (JAX handles placement).

    def __call__(self, d_seq_emb, p_seq_emb, d_HIN_emb, p_HIN_emb, neg_num=None):
        if d_seq_emb.shape[0] == 1:
            # torch returns python int 0 here; return a jit-safe f32 0.
            return jnp.asarray(0.0, jnp.float32)
        return contrast_loss(d_seq_emb, p_seq_emb, d_HIN_emb, p_HIN_emb,
                             tau=self.tau, lam=self.lam,
                             mxu_dtype=self.mxu_dtype,
                             block_rows=self.block_rows)


# ----------------------------------------------------------------------------
# Pure-JAX reference (mirrors the PyTorch code literally) for verification.
# ----------------------------------------------------------------------------
def _sim_ref(z1, z2, tau):
    n1 = jnp.linalg.norm(z1, axis=-1, keepdims=True)
    n2 = jnp.linalg.norm(z2, axis=-1, keepdims=True)
    num = jnp.matmul(z1, z2.T, precision=lax.Precision.HIGHEST)
    den = jnp.matmul(n1, n2.T, precision=lax.Precision.HIGHEST)
    return jnp.exp(num / den / tau)


def _forward_ref(d_seq, p_seq, d_hin, p_hin, tau, lam):
    B = d_seq.shape[0]
    pos = jnp.eye(B, dtype=jnp.float32)

    def one(m):
        diag = jnp.sum(m * pos, axis=1)
        row = jnp.sum(m, axis=1).reshape(-1, 1) + 1e-8
        return -jnp.mean(jnp.log(diag / row))

    sd = _sim_ref(d_seq, d_hin, tau)
    sp = _sim_ref(p_seq, p_hin, tau)
    d1, d2 = one(sd), one(sd.T)
    p1, p2 = one(sp), one(sp.T)
    return lam * d1 + (0.5 - lam) * d2 + lam * p1 + (0.5 - lam) * p2


if __name__ == "__main__":
    tau, lam = 0.5, 0.3
    key = jax.random.PRNGKey(0)
    k1, k2, k3, k4, k5, k6, k7, k8 = jax.random.split(key, 8)

    # ---- small shapes: whole-block fused kernel, f32 MXU, exact parity ----
    B, H = 8, 32
    d_seq = jax.random.normal(k1, (B, H), jnp.float32)
    p_seq = jax.random.normal(k2, (B, H), jnp.float32)
    d_hin = jax.random.normal(k3, (B, H), jnp.float32)
    p_hin = jax.random.normal(k4, (B, H), jnp.float32)

    module = Contrast(hidden_dim=H, tau=tau, lam=lam, batch_size=B)
    loss = jax.block_until_ready(module(d_seq, p_seq, d_hin, p_hin, neg_num=4))
    ref = _forward_ref(d_seq, p_seq, d_hin, p_hin, tau, lam)
    assert jnp.allclose(loss, ref, rtol=1e-5, atol=1e-5), (loss, ref)

    # batch_size == 1 early-return (torch returns 0)
    l1 = jax.block_until_ready(module(d_seq[:1], p_seq[:1], d_hin[:1], p_hin[:1],
                                      neg_num=4))
    assert float(l1) == 0.0

    # ---- medium shapes: tiled flash-style path; non-aligned B exercises the
    #      padded-row / masked-column logic and the cb==rb diag extraction ----
    B2, H2 = 200, 96
    d_seq2 = jax.random.normal(k5, (B2, H2), jnp.float32)
    p_seq2 = jax.random.normal(k6, (B2, H2), jnp.float32)
    d_hin2 = jax.random.normal(k7, (B2, H2), jnp.float32)
    p_hin2 = jax.random.normal(k8, (B2, H2), jnp.float32)
    ref2 = _forward_ref(d_seq2, p_seq2, d_hin2, p_hin2, tau, lam)

    loss_t = jax.block_until_ready(contrast_loss(
        d_seq2, p_seq2, d_hin2, p_hin2, tau=tau, lam=lam, force_path="tiled"))
    assert jnp.allclose(loss_t, ref2, rtol=1e-3, atol=1e-3), (loss_t, ref2)

    # bf16 MXU feed (production recommendation on v5e / v6e / v7x)
    loss_tb = jax.block_until_ready(contrast_loss(
        d_seq2, p_seq2, d_hin2, p_hin2, tau=tau, lam=lam,
        mxu_dtype=jnp.bfloat16, force_path="tiled"))
    assert jnp.allclose(loss_tb, ref2, rtol=3e-2, atol=3e-2), (loss_tb, ref2)

    print("KERNEL_OK")
</pallas_src>

<mosaic_0001>
module attributes {stable_mosaic.version = 11 : i64} {
  func.func @_contrast_small_kernel(%arg0: memref<8x32xf32, #tpu.memory_space<vmem>>, %arg1: memref<8x32xf32, #tpu.memory_space<vmem>>, %arg2: memref<8x32xf32, #tpu.memory_space<vmem>>, %arg3: memref<8x32xf32, #tpu.memory_space<vmem>>, %arg4: memref<1xf32, #tpu.memory_space<smem>>) attributes {dimension_semantics = [], scalar_prefetch = 0 : i64, scratch_operands = 0 : i64, tpu.core_type = #tpu.core_type<tc>} {
    %c0 = arith.constant 0 : index
    %c0_0 = arith.constant 0 : index
    %0 = vector.load %arg0[%c0, %c0_0] : memref<8x32xf32, #tpu.memory_space<vmem>>, vector<8x32xf32>
    %1 = arith.mulf %0, %0 : vector<8x32xf32>
    %cst = arith.constant dense<0.000000e+00> : vector<8xf32>
    %2 = vector.multi_reduction <add>, %1, %cst [1] : vector<8x32xf32> to vector<8xf32>
    %3 = vector.shape_cast %2 : vector<8xf32> to vector<8x1xf32>
    %cst_1 = arith.constant 0.000000e+00 : f32
    %4 = vector.broadcast %cst_1 : f32 to vector<8x1xf32>
    %5 = arith.cmpf ogt, %3, %4 : vector<8x1xf32>
    %6 = math.rsqrt %3 : vector<8x1xf32>
    %cst_2 = arith.constant 0.000000e+00 : f32
    %7 = vector.broadcast %cst_2 : f32 to vector<8x1xf32>
    %8 = arith.select %5, %6, %7 : vector<8x1xi1>, vector<8x1xf32>
    %9 = vector.broadcast %8 : vector<8x1xf32> to vector<8x32xf32>
    %10 = arith.mulf %0, %9 : vector<8x32xf32>
    %c0_3 = arith.constant 0 : index
    %c0_4 = arith.constant 0 : index
    %11 = vector.load %arg2[%c0_3, %c0_4] : memref<8x32xf32, #tpu.memory_space<vmem>>, vector<8x32xf32>
    %12 = arith.mulf %11, %11 : vector<8x32xf32>
    %cst_5 = arith.constant dense<0.000000e+00> : vector<8xf32>
    %13 = vector.multi_reduction <add>, %12, %cst_5 [1] : vector<8x32xf32> to vector<8xf32>
    %14 = vector.shape_cast %13 : vector<8xf32> to vector<8x1xf32>
    %cst_6 = arith.constant 0.000000e+00 : f32
    %15 = vector.broadcast %cst_6 : f32 to vector<8x1xf32>
    %16 = arith.cmpf ogt, %14, %15 : vector<8x1xf32>
    %17 = math.rsqrt %14 : vector<8x1xf32>
    %cst_7 = arith.constant 0.000000e+00 : f32
    %18 = vector.broadcast %cst_7 : f32 to vector<8x1xf32>
    %19 = arith.select %16, %17, %18 : vector<8x1xi1>, vector<8x1xf32>
    %20 = vector.broadcast %19 : vector<8x1xf32> to vector<8x32xf32>
    %21 = arith.mulf %11, %20 : vector<8x32xf32>
    %22 = tpu.concatenate %10, %21 in 0 : vector<8x32xf32>, vector<8x32xf32> -> vector<16x32xf32>
    %c0_8 = arith.constant 0 : index
    %c0_9 = arith.constant 0 : index
    %23 = vector.load %arg1[%c0_8, %c0_9] : memref<8x32xf32, #tpu.memory_space<vmem>>, vector<8x32xf32>
    %24 = arith.mulf %23, %23 : vector<8x32xf32>
    %cst_10 = arith.constant dense<0.000000e+00> : vector<8xf32>
    %25 = vector.multi_reduction <add>, %24, %cst_10 [1] : vector<8x32xf32> to vector<8xf32>
    %26 = vector.shape_cast %25 : vector<8xf32> to vector<8x1xf32>
    %cst_11 = arith.constant 0.000000e+00 : f32
    %27 = vector.broadcast %cst_11 : f32 to vector<8x1xf32>
    %28 = arith.cmpf ogt, %26, %27 : vector<8x1xf32>
    %29 = math.rsqrt %26 : vector<8x1xf32>
    %cst_12 = arith.constant 0.000000e+00 : f32
    %30 = vector.broadcast %cst_12 : f32 to vector<8x1xf32>
    %31 = arith.select %28, %29, %30 : vector<8x1xi1>, vector<8x1xf32>
    %32 = vector.broadcast %31 : vector<8x1xf32> to vector<8x32xf32>
    %33 = arith.mulf %23, %32 : vector<8x32xf32>
    %c0_13 = arith.constant 0 : index
    %c0_14 = arith.constant 0 : index
    %34 = vector.load %arg3[%c0_13, %c0_14] : memref<8x32xf32, #tpu.memory_space<vmem>>, vector<8x32xf32>
    %35 = arith.mulf %34, %34 : vector<8x32xf32>
    %cst_15 = arith.constant dense<0.000000e+00> : vector<8xf32>
    %36 = vector.multi_reduction <add>, %35, %cst_15 [1] : vector<8x32xf32> to vector<8xf32>
    %37 = vector.shape_cast %36 : vector<8xf32> to vector<8x1xf32>
    %cst_16 = arith.constant 0.000000e+00 : f32
    %38 = vector.broadcast %cst_16 : f32 to vector<8x1xf32>
    %39 = arith.cmpf ogt, %37, %38 : vector<8x1xf32>
    %40 = math.rsqrt %37 : vector<8x1xf32>
    %cst_17 = arith.constant 0.000000e+00 : f32
    %41 = vector.broadcast %cst_17 : f32 to vector<8x1xf32>
    %42 = arith.select %39, %40, %41 : vector<8x1xi1>, vector<8x1xf32>
    %43 = vector.broadcast %42 : vector<8x1xf32> to vector<8x32xf32>
    %44 = arith.mulf %34, %43 : vector<8x32xf32>
    %45 = tpu.concatenate %33, %44 in 0 : vector<8x32xf32>, vector<8x32xf32> -> vector<16x32xf32>
    %cst_18 = arith.constant dense<0.000000e+00> : vector<16x16xf32>
    %46 = tpu.matmul %22, %45, %cst_18 {dimension_numbers = #tpu.dot_dimension_numbers<[1], [1], [0], [0], [0, 0, 1, 0], [], []>} : vector<16x32xf32>, vector<16x32xf32>, vector<16x16xf32> -> vector<16x16xf32>
    %cst_19 = arith.constant 2.000000e+00 : f32
    %47 = vector.broadcast %cst_19 : f32 to vector<16x16xf32>
    %48 = arith.mulf %46, %47 : vector<16x16xf32>
    %49 = tpu.iota {dimensions = array<i32: 0>} : vector<16x16xi32>
    %50 = tpu.iota {dimensions = array<i32: 1>} : vector<16x16xi32>
    %c8_i32 = arith.constant 8 : i32
    %51 = vector.broadcast %c8_i32 : i32 to vector<16x16xi32>
    %52 = arith.cmpi slt, %49, %51 : vector<16x16xi32>
    %c8_i32_20 = arith.constant 8 : i32
    %53 = vector.broadcast %c8_i32_20 : i32 to vector<16x16xi32>
    %54 = arith.cmpi slt, %50, %53 : vector<16x16xi32>
    %55 = arith.xori %52, %54 : vector<16x16xi1>
    %cst_21 = arith.constant dense<true> : vector<16x16xi1>
    %56 = arith.xori %55, %cst_21 : vector<16x16xi1>
    %57 = math.exp %48 : vector<16x16xf32>
    %cst_22 = arith.constant 0.000000e+00 : f32
    %58 = vector.broadcast %cst_22 : f32 to vector<16x16xf32>
    %59 = arith.select %56, %57, %58 : vector<16x16xi1>, vector<16x16xf32>
    %cst_23 = arith.constant dense<0.000000e+00> : vector<16xf32>
    %60 = vector.multi_reduction <add>, %59, %cst_23 [1] : vector<16x16xf32> to vector<16xf32>
    %61 = vector.shape_cast %60 : vector<16xf32> to vector<16x1xf32>
    %cst_24 = arith.constant dense<0.000000e+00> : vector<16xf32>
    %62 = vector.multi_reduction <add>, %59, %cst_24 [0] : vector<16x16xf32> to vector<16xf32>
    %63 = vector.shape_cast %62 : vector<16xf32> to vector<1x16xf32>
    %64 = arith.mulf %22, %45 : vector<16x32xf32>
    %cst_25 = arith.constant dense<0.000000e+00> : vector<16xf32>
    %65 = vector.multi_reduction <add>, %64, %cst_25 [1] : vector<16x32xf32> to vector<16xf32>
    %66 = vector.shape_cast %65 : vector<16xf32> to vector<16x1xf32>
    %cst_26 = arith.constant 2.000000e+00 : f32
    %67 = vector.broadcast %cst_26 : f32 to vector<16x1xf32>
    %68 = arith.mulf %66, %67 : vector<16x1xf32>
    %69 = vector.shape_cast %68 : vector<16x1xf32> to vector<1x16x1xf32>
    %cst_27 = arith.constant dense<0.000000e+00> : vector<1xf32>
    %70 = vector.multi_reduction <add>, %69, %cst_27 [1, 2] : vector<1x16x1xf32> to vector<1xf32>
    %71 = vector.shape_cast %70 : vector<1xf32> to vector<1x1x1xf32>
    %72 = vector.extract %71[0, 0, 0] : f32 from vector<1x1x1xf32>
    %cst_28 = arith.constant 9.99999993E-9 : f32
    %73 = vector.broadcast %cst_28 : f32 to vector<16x1xf32>
    %74 = arith.addf %61, %73 : vector<16x1xf32>
    %75 = math.log %74 : vector<16x1xf32>
    %76 = vector.shape_cast %75 : vector<16x1xf32> to vector<1x16x1xf32>
    %cst_29 = arith.constant dense<0.000000e+00> : vector<1xf32>
    %77 = vector.multi_reduction <add>, %76, %cst_29 [1, 2] : vector<1x16x1xf32> to vector<1xf32>
    %78 = vector.shape_cast %77 : vector<1xf32> to vector<1x1x1xf32>
    %79 = vector.extract %78[0, 0, 0] : f32 from vector<1x1x1xf32>
    %80 = arith.subf %79, %72 : f32
    %cst_30 = arith.constant 8.000000e+00 : f32
    %81 = arith.divf %80, %cst_30 : f32
    %cst_31 = arith.constant 9.99999993E-9 : f32
    %82 = vector.broadcast %cst_31 : f32 to vector<1x16xf32>
    %83 = arith.addf %63, %82 : vector<1x16xf32>
    %84 = math.log %83 : vector<1x16xf32>
    %85 = vector.shape_cast %84 : vector<1x16xf32> to vector<1x1x16xf32>
    %cst_32 = arith.constant dense<0.000000e+00> : vector<1xf32>
    %86 = vector.multi_reduction <add>, %85, %cst_32 [1, 2] : vector<1x1x16xf32> to vector<1xf32>
    %87 = vector.shape_cast %86 : vector<1xf32> to vector<1x1x1xf32>
    %88 = vector.extract %87[0, 0, 0] : f32 from vector<1x1x1xf32>
    %89 = arith.subf %88, %72 : f32
    %cst_33 = arith.constant 8.000000e+00 : f32
    %90 = arith.divf %89, %cst_33 : f32
    %cst_34 = arith.constant 3.000000e-01 : f32
    %91 = arith.mulf %cst_34, %81 : f32
    %cst_35 = arith.constant 2.000000e-01 : f32
    %92 = arith.mulf %cst_35, %90 : f32
    %93 = arith.addf %91, %92 : f32
    %c0_36 = arith.constant 0 : index
    %94 = memref.load %arg4[%c0_36] : memref<1xf32, #tpu.memory_space<smem>>
    memref.store %93, %arg4[%c0_36] : memref<1xf32, #tpu.memory_space<smem>>
    return
  }
}

</mosaic_0001>

<bundles_post_ra>
// kernel: tpu_custom_call.1
= control target key start
LH: loop header
LB: loop body
LE: loop exit
PB: predicated region body
PF: predicated region fallthrough
CT: control target
= control target key end

     0   :  { %9 = vsyncpa [#allocation3], 0  ;;  %s510_s0 = inlined_call_operand.hbm [shape: f32[8,32], index: 0, kind: input, shape index: {}]   ;;  %s511_s1 = inlined_call_operand.hbm [shape: f32[8,32], index: 1, kind: input, shape index: {}]   ;;  %s512_s2 = inlined_call_operand.hbm [shape: f32[8,32], index: 2, kind: input, shape index: {}]   ;;  %s513_s3 = inlined_call_operand.hbm [shape: f32[8,32], index: 3, kind: input, shape index: {}]   ;;  %s514_s4 = inlined_call_operand.hbm [shape: f32[1], index: 4, kind: output, shape index: {}]  }
   0x1   :  { %10 = vsyncpa [#allocation6], 0 }
   0x2   :  { %11 = vsyncpa [#allocation9], 0 }
   0x3   :  { %12 = vsyncpa [#allocation4], 0  ;;  %s448_s15 = smov [#allocation5]   ;;  %s449_s17 = smov [#allocation2]  }
   0x4   :  { %s29_s16 = sshll.u32 %s448_s15, 4  ;;  %s19_s18 = sshll.u32 %s449_s17, 4  ;;  %s30_s16 = int_to_ptr.vmem [resolvable:$true] %s29_s16  ;;  %s20_s18 = int_to_ptr.vmem [resolvable:$true] %s19_s18 }
   0x5   :  { %s360_s19 = scalar_lea.vmem %s30_s16, 128  ;;  %p365_p1 = scmp.lt.s32.totalorder %s30_s16, %s30_s16 }
   0x6   :  { %p361_p0 = scmp.ne.s32.totalorder %s30_s16, %s360_s19  ;;  %p366_p2 = scmp.lt.s32.totalorder %s360_s19, %s360_s19 }
   0x8   :  { %p367_p3 = por %p366_p2, %p365_p1 }
   0xa   :  { %p368_p4 = pnand %p367_p3, %p361_p0 }
   0xc   :  { %371 = shalt.err (!%p368_p4)
}
   0xd   :  { %32 = dma.hbm_to_vmem [thread:$0]  %s511_s1, 128, %s30_s16, [#allocation6]  }
   0xe   :  { %s380_s22 = scalar_lea.vmem %s20_s18, 128  ;;  %p385_p6 = scmp.lt.s32.totalorder %s20_s18, %s20_s18 }
   0xf   :  { %p381_p5 = scmp.ne.s32.totalorder %s20_s18, %s380_s22  ;;  %p386_p7 = scmp.lt.s32.totalorder %s380_s22, %s380_s22 }
  0x11   :  { %p387_p8 = por %p386_p7, %p385_p6 }
  0x13   :  { %p388_p9 = pnand %p387_p8, %p381_p5 }
  0x15   :  { %391 = shalt.err (!%p388_p9)
}
  0x16   :  { %22 = dma.hbm_to_vmem [thread:$0]  %s510_s0, 128, %s20_s18, [#allocation3]  }
  0x17   :  { %s450_s25 = smov [#allocation7]   ;;  %s451_s27 = smov [#allocation8]  }
  0x18   :  { %s39_s26 = sshll.u32 %s450_s25, 4  ;;  %s49_s28 = sshll.u32 %s451_s27, 4  ;;  %s40_s26 = int_to_ptr.vmem [resolvable:$true] %s39_s26  ;;  %s50_s28 = int_to_ptr.vmem [resolvable:$true] %s49_s28 }
  0x19   :  { %s400_s29 = scalar_lea.vmem %s40_s26, 128  ;;  %p405_p11 = scmp.lt.s32.totalorder %s40_s26, %s40_s26 }
  0x1a   :  { %p401_p10 = scmp.ne.s32.totalorder %s40_s26, %s400_s29  ;;  %p406_p12 = scmp.lt.s32.totalorder %s400_s29, %s400_s29 }
  0x1c   :  { %p407_p13 = por %p406_p12, %p405_p11 }
  0x1e   :  { %p408_p0 = pnand %p407_p13, %p401_p10 }
  0x20   :  { %411 = shalt.err (!%p408_p0)
}
  0x21   :  { %42 = dma.hbm_to_vmem [thread:$0]  %s512_s2, 128, %s40_s26, [#allocation6]  }
  0x22   :  { %s420_s5 = scalar_lea.vmem %s50_s28, 128  ;;  %p425_p2 = scmp.lt.s32.totalorder %s50_s28, %s50_s28 }
  0x23   :  { %p421_p1 = scmp.ne.s32.totalorder %s50_s28, %s420_s5  ;;  %p426_p3 = scmp.lt.s32.totalorder %s420_s5, %s420_s5 }
  0x25   :  { %p427_p4 = por %p426_p3, %p425_p2 }
  0x27   :  { %p428_p5 = pnand %p427_p4, %p421_p1 }
  0x29   :  { %431 = shalt.err (!%p428_p5)
}
  0x2a   :  { %52 = dma.hbm_to_vmem [thread:$0]  %s513_s3, 128, %s50_s28, [#allocation9]  }
  0x2b   :  { %440 = dma.done.wait [#allocation3], 128  }
  0x2c   :  { %441 = vsyncadd [#allocation3], 4294967168 }
  0x2d   :  { %442 = dma.done.wait [#allocation6], 256  }
  0x2e   :  { %443 = vsyncadd [#allocation6], 4294967040 }
  0x2f   :  { %444 = dma.done.wait [#allocation9], 128  }
  0x30   :  { %445 = vsyncadd [#allocation9], 4294967168  ;;  %vm67_vm0 = vcmask 261120   ;;  %v93_v0 = vld [vmem:[#allocation8] sm:$0xff]  ;;  %v65_v1 = vld [vmem:[#allocation2] sm:$0xff]  ;;  %v194_v35 = vlaneseq  ;;  %vm452_vm6 = vmmov 1  }
  0x31   :  { %v84_v2 = vld [vmem:[#allocation5] sm:$0xff]  ;;  %v94_v3 = vmul.f32 %v93_v0, %v93_v0  ;;  %v66_v4 = vmul.f32 %v65_v1, %v65_v1  ;;  %v75_v6 = vld [vmem:[#allocation7] sm:$0xff]  ;;  %vm209_vm9 = vcmask 130048   ;;  %vm233_vm11 = vcmask 7168   ;;  %s453_s15 = smov [#allocation10]  }
  0x32   :  { %v85_v5 = vmul.f32 %v84_v2, %v84_v2  ;;  %v76_v7 = vmul.f32 %v75_v6, %v75_v6  ;;  %v195_v37 = vand.u32 127, %v194_v35  ;;  %vm271_vm12 = vcmask 122880  }
  0x33   :  { %v95_v8 = vsel %vm67_vm0, %v94_v3, 0.0  ;;  %v68_v9 = vsel %vm67_vm0, %v66_v4, 0.0 }
  0x34   :  { %96 = vadd.xlane.f32.xlu0 %v95_v8  ;;  %69 = vadd.xlane.f32.xlu1 %v68_v9  ;;  %v86_v10 = vsel %vm67_vm0, %v85_v5, 0.0  ;;  %v77_v11 = vsel %vm67_vm0, %v76_v7, 0.0  ;;  %vm198_vm5 = vcmp.lt.s32.totalorder %v195_v37, 8 }
  0x35   :  { %vm199_vm7 = vmxor %vm452_vm6, %vm198_vm5 }
  0x36   :  { %vm202_vm8 = vmxor %vm198_vm5, %vm452_vm6 }
  0x37   :  { %vm201_vm10 = vmxor %vm199_vm7, %vm452_vm6 }
  0x38   :  { %87 = vadd.xlane.f32.xlu0 %v86_v10  ;;  %78 = vadd.xlane.f32.xlu1 %v77_v11 }
  0xbd   :  { %v97_v12 = vpop.xlane.xlu0 %96  ;;  %v70_v13 = vpop.xlane.xlu1 %69 }
  0xbe   :  { %334 = vrsqrt.f32 %v97_v12  ;;  %vm98_vm1 = vcmp.gt.f32.partialorder %v97_v12, 0.0  ;;  %vm71_vm2 = vcmp.gt.f32.partialorder %v70_v13, 0.0 }
  0xbf   :  { %336 = vrsqrt.f32 %v70_v13 }
  0xc1   :  { %v88_v14 = vpop.xlane.xlu0 %87  ;;  %v79_v15 = vpop.xlane.xlu1 %78 }
  0xc2   :  { %338 = vrsqrt.f32 %v88_v14  ;;  %vm89_vm3 = vcmp.gt.f32.partialorder %v88_v14, 0.0  ;;  %vm80_vm4 = vcmp.gt.f32.partialorder %v79_v15, 0.0 }
  0xc3   :  { %340 = vrsqrt.f32 %v79_v15 }
  0xcb   :  { %v335_v16 = vpop.eup %334 }
  0xcc   :  { %v337_v17 = vpop.eup %336  ;;  %v100_v18 = vsel %vm98_vm1, %v335_v16, 0.0 }
  0xcd   :  { %v101_v19 = vmul.f32 %v100_v18, %v93_v0  ;;  %v73_v20 = vsel %vm71_vm2, %v337_v17, 0.0 }
  0xce   :  { %v74_v21 = vmul.f32 %v73_v20, %v65_v1 }
  0xcf   :  { %v339_v22 = vpop.eup %338  ;;  %315 = vmatprep.subr.msk.mxu0 %vm67_vm0, %v101_v19 }
  0xd0   :  { %v341_v23 = vpop.eup %340  ;;  %v91_v24 = vsel %vm89_vm3, %v339_v22, 0.0  ;;  %319 = vmatprep.mubr.msk.f32.mxu0 %vm67_vm0, %v74_v21  ;;  %316 = vmatpush3.xpose.msk.msra.mxu0 %vm67_vm0, %v101_v19 }
  0xd1   :  { %v92_v25 = vmul.f32 %v91_v24, %v84_v2  ;;  %v82_v26 = vsel %vm80_vm4, %v341_v23, 0.0 }
  0xd2   :  { %v83_v27 = vmul.f32 %v82_v26, %v75_v6 }
  0xd3   :  { %317 = vmatprep.subr.msk.mxu0 %vm67_vm0, %v92_v25  ;;  %v223_v28 = vmul.f32 %v92_v25, %v74_v21 }
  0xd4   :  { %318 = vmatpush3.xpose.msk.msra.mxu0 %vm67_vm0, %v92_v25  ;;  %v224_v29 = vmul.f32 %v101_v19, %v83_v27 }
  0xd5   :  { %v225_v46 = vsel %vm67_vm0, %v223_v28, 0.0 }
  0xd6   :  { %v228_v45 = vsel %vm67_vm0, %v224_v29, 0.0 }
  0xd7   :  { %320 = vmatmul.mubr.msk.f32.vlgmr.msra.gmra.mxu0 %vm67_vm0, %v83_v27 }
 0x197   :  { %v321_v30 = vpop.f32.mrf.mxu0 }
 0x198   :  { %v190_v31 = vmul.f32 2.0, %v321_v30 }
 0x199   :  { %v180_v32 = vpop.f32.mrf.mxu0 }
 0x19a   :  { %v205_v33 = vmul.f32 1.442695, %v190_v31  ;;  %v189_v34 = vmul.f32 2.0, %v180_v32 }
 0x19c   :  { %342 = vpow2.f32 %v205_v33  ;;  %v203_v36 = vmul.f32 1.442695, %v189_v34 }
 0x19e   :  { %344 = vpow2.f32 %v203_v36 }
 0x1a9   :  { %v343_v38 = vpop.eup %342 }
 0x1aa   :  { %v208_v39 = vsel %vm202_vm8, %v343_v38, 0.0 }
 0x1ab   :  { %v345_v40 = vpop.eup %344  ;;  %v213_v41 = vsel %vm209_vm9, %v208_v39, 0.0 }
 0x1ac   :  { %214 = vadd.xlane.f32.xlu1 %v213_v41  ;;  %v207_v42 = vsel %vm201_vm10, %v345_v40, 0.0 }
 0x1ad   :  { %v210_v43 = vsel %vm209_vm9, %v207_v42, 0.0 }
 0x1ae   :  { %211 = vadd.xlane.f32.xlu0 %v210_v43  ;;  %v216_v44 = vadd.f32 %v213_v41, %v210_v43 }
 0x1b0   :  { %229 = vadd.xlane.f32.xlu1 %v228_v45  ;;  %v217_v47 = vrot.slane %v216_v44, 4 }
 0x1b2   :  { %226 = vadd.xlane.f32.xlu0 %v225_v46  ;;  %v218_v48 = vadd.f32 %v217_v47, %v216_v44 }
 0x1b4   :  { %v219_v49 = vrot.slane %v218_v48, 2 }
 0x1b6   :  { %v220_v50 = vadd.f32 %v219_v49, %v218_v48 }
 0x1b8   :  { %v221_v51 = vrot.slane %v220_v50, 1 }
 0x1ba   :  { %v222_v52 = vadd.f32 %v221_v51, %v220_v50 }
 0x1bc   :  { %v268_v53 = vadd.f32 1e-08, %v222_v52 }
 0x1be   :  { %346 = vlog2.f32 %v268_v53 }
 0x1cb   :  { %v347_v62 = vpop.eup %346 }
 0x1cc   :  { %v270_v2 = vmul.f32 0.6931472, %v347_v62 }
 0x1ce   :  { %v272_v3 = vsel %vm271_vm12, %v270_v2, 0.0 }
 0x235   :  { %v215_v54 = vpop.xlane.xlu1 %214 }
 0x236   :  { %v247_v55 = vadd.f32 1e-08, %v215_v54 }
 0x237   :  { %v212_v56 = vpop.xlane.xlu0 %211 }
 0x238   :  { %348 = vlog2.f32 %v247_v55  ;;  %v246_v57 = vadd.f32 1e-08, %v212_v56 }
 0x239   :  { %v230_v58 = vpop.xlane.xlu1 %229 }
 0x23a   :  { %350 = vlog2.f32 %v246_v57  ;;  %v232_v59 = vmul.f32 2.0, %v230_v58 }
 0x23b   :  { %v227_v60 = vpop.xlane.xlu0 %226 }
 0x23c   :  { %v231_v61 = vmul.f32 2.0, %v227_v60  ;;  %v235_v0 = vsel %vm233_vm11, %v232_v59, 0.0 }
 0x23e   :  { %v234_v63 = vsel %vm233_vm11, %v231_v61, 0.0 }
 0x23f   :  { %v236_v1 = vadd.f32 %v235_v0, %v234_v63 }
 0x241   :  { %237 = vadd.xlane.f32.xlu0 %v236_v1 }
 0x245   :  { %v349_v4 = vpop.eup %348  ;;  %273 = vadd.xlane.f32.xlu0 %v272_v3 }
 0x246   :  { %v251_v5 = vmul.f32 0.6931472, %v349_v4 }
 0x247   :  { %v351_v6 = vpop.eup %350 }
 0x248   :  { %v249_v7 = vmul.f32 0.6931472, %v351_v6  ;;  %v253_v9 = vsel %vm233_vm11, %v251_v5, 0.0 }
 0x24a   :  { %v252_v8 = vsel %vm233_vm11, %v249_v7, 0.0 }
 0x24b   :  { %v254_v10 = vadd.f32 %v253_v9, %v252_v8 }
 0x24d   :  { %255 = vadd.xlane.f32.xlu1 %v254_v10 }
 0x2ca   :  { %v238_v11 = vpop.xlane.xlu0 %237 }
 0x2cb   :  { %v239_v12 = vrot.slane %v238_v11, 4 }
 0x2cd   :  { %v240_v13 = vadd.f32 %v239_v12, %v238_v11 }
 0x2ce   :  { %v274_v14 = vpop.xlane.xlu0 %273 }
 0x2cf   :  { %v241_v15 = vrot.slane %v240_v13, 2  ;;  %v275_v16 = vrot.slane %v274_v14, 4 }
 0x2d1   :  { %v242_v17 = vadd.f32 %v241_v15, %v240_v13  ;;  %v276_v18 = vadd.f32 %v275_v16, %v274_v14 }
 0x2d3   :  { %v243_v19 = vrot.slane %v242_v17, 1  ;;  %v277_v21 = vrot.slane %v276_v18, 2 }
 0x2d5   :  { %v244_v20 = vadd.f32 %v243_v19, %v242_v17  ;;  %v278_v25 = vadd.f32 %v277_v21, %v276_v18 }
 0x2d6   :  { %v256_v22 = vpop.xlane.xlu1 %255 }
 0x2d7   :  { %v257_v23 = vrot.slane %v256_v22, 4  ;;  %322 = vpush %v244_v20  ;;  %v279_v28 = vrot.slane %v278_v25, 1 }
 0x2d9   :  { %v258_v24 = vadd.f32 %v257_v23, %v256_v22  ;;  %v280_v31 = vadd.f32 %v279_v28, %v278_v25 }
 0x2db   :  { %v259_v26 = vrot.slane %v258_v24, 2 }
 0x2dd   :  { %v260_v27 = vadd.f32 %v259_v26, %v258_v24 }
 0x2df   :  { %v261_v29 = vrot.slane %v260_v27, 1 }
 0x2e1   :  { %v262_v30 = vadd.f32 %v261_v29, %v260_v27 }
 0x2e3   :  { %324 = vpush %v262_v30 }
 0x2e4   :  { %326 = vpush %v280_v31 }
 0x308   :  { %s323_s2 = spop %322 }
 0x314   :  { %s325_s3 = spop %324 }
 0x315   :  { %s264_s7 = ssub.f32 %s325_s3, %s323_s2  ;;  %s327_s8 = spop %326 }
 0x316   :  { %s282_s9 = ssub.f32 %s327_s8, %s323_s2 }
 0x317   :  { %s267_s10 = smul.f32 0.125, %s264_s7 }
 0x318   :  { %s285_s11 = smul.f32 0.125, %s282_s9 }
 0x319   :  { %s286_s12 = smul.f32 0.3, %s267_s10 }
 0x31a   :  { %s287_s13 = smul.f32 0.2, %s285_s11 }
 0x31c   :  { %s288_s14 = sadd.f32 %s287_s13, %s286_s12 }
 0x31e   :  { %290 = sst [smem:[#allocation10]] %s288_s14 }
 0x31f   :  { %298 = dma.smem_to_hbm %s453_s15, 16, %s514_s4, [#allocation4]  }
 0x320   :  { %446 = dma.done.wait [#allocation4], 16  }
 0x321   :  { %447 = vsyncadd [#allocation4], 4294967280 }
 0x322   :  { %302 = sfence }
 0x323   :  { %303 = vsyncpa [#allocation3], 1 }
 0x324   :  { %304 = vsyncpa [#allocation6], 1 }
 0x325   :  { %305 = vsyncpa [#allocation9], 1 }
 0x326   :  { %306 = vsyncpa [#allocation4], 1 }

</bundles_post_ra>
